<compile_context>
chip_gen: v7x
topology: tpu7x:2x2x1
jax: 0.10.0
libtpu: 0.0.40
codegen_flags: <defaults>
</compile_context>

<pallas_src>
import functools

import numpy as np

import jax
import jax.numpy as jnp
from jax.experimental import pallas as pl
from jax.experimental.pallas import tpu as pltpu


# ----------------------------------------------------------------------------
# Kernel
# ----------------------------------------------------------------------------
def _maxpool2x2_kernel(x_ref, s_ref, o_ref, *, w, compute_dtype):
    # x_ref: (R, G*2W)        -- G row-pairs per row, each chunk = [row 2p | row 2p+1]
    # s_ref: (G*2W - W, 2*G*Wh)  one-hot column selector (resident, DMA'd once)
    # o_ref: (R, G*Wh)
    x = x_ref[...]
    lin = x.shape[1]

    # ---- pool the two rows of every pair (VPU) -----------------------------
    # pair[:, g*2W + m] = max(row 2p col m, row 2p+1 col m) for m < W.
    # NOTE: x[:, w:] starts at an unaligned lane when W % 128 != 0, which costs
    # one XLU lane-rotate pass over the block (flagged in review; cheap vs the
    # HBM traffic that bounds this kernel).
    pair = jnp.maximum(x[:, : lin - w], x[:, w:]).astype(compute_dtype)

    # ---- NaN/Inf-safe column compaction (MXU) -------------------------------
    # A raw one-hot selection matmul turns any Inf/NaN in a row into NaN for
    # every output of that row (0 * Inf = NaN inside the dot).  Select a
    # sanitized value and a tiny class code through the SAME fused selector,
    # then reconstruct, so non-finite values stay confined to their own window.
    finite = jnp.abs(pair) < jnp.inf
    is_nan = pair != pair
    clean = jnp.where(finite, pair, jnp.zeros_like(pair))
    code = jnp.where(
        finite, 0.0,
        jnp.where(is_nan, 1.0, jnp.where(pair > 0, 2.0, 3.0)),
    ).astype(compute_dtype)

    sel = s_ref[...]
    # Single fused selector covers both even and odd source columns (review
    # item #1).  The second dot exists only to carry the non-finite class code.
    vals = jnp.dot(clean, sel, preferred_element_type=jnp.float32)
    codes = jnp.dot(code, sel, preferred_element_type=jnp.float32)

    n = sel.shape[1] // 2

    def decode(v, c):
        v = jnp.where(c == 1.0, jnp.nan, v)
        v = jnp.where(c == 2.0, jnp.inf, v)
        v = jnp.where(c == 3.0, -jnp.inf, v)
        return v

    even = decode(vals[:, :n], codes[:, :n])
    odd = decode(vals[:, n:], codes[:, n:])
    o_ref[...] = jnp.maximum(even, odd).astype(o_ref.dtype)


# ----------------------------------------------------------------------------
# Wrapper helpers
# ----------------------------------------------------------------------------
def _choose_group(p, w):
    """Row-pairs packed per kernel row.

    Aim for g*2*w >= 256 lanes (dense DMA / dense stores) while capping
    g*w <= 128 so the selection matmul stays ~128 MACs/element (well under the
    HBM roofline even on v5e).  g must divide the total row-pair count p so the
    grouped view is a free reshape; falls back to 1 for awkward p.
    """
    cap = max(1, 128 // w)
    best = 1
    for g in range(1, min(cap, p) + 1):
        if p % g == 0:
            best = g
            if g * 2 * w >= 256:
                break
    return best


def _vmem_budget():
    """(block+temporary budget, vmem_limit_bytes), generation aware."""
    kind = ""
    try:
        kind = jax.devices()[0].device_kind.lower()
    except Exception:
        pass
    if any(t in kind for t in ("v4", "v5", "v6")):
        return 40 * 2**20, 96 * 2**20       # 128 MiB VMEM parts
    # v7x (64 MiB VMEM) or unknown: stay conservative.
    return 20 * 2**20, 44 * 2**20


def _choose_rows(q, bytes_per_row, budget_bytes, min_steps=4):
    """Largest sublane-aligned row block that fits the budget while keeping
    >= min_steps grid steps (>= 2 per v7x TensorCore) when q is big enough."""
    r_budget = max(8, (budget_bytes // max(1, bytes_per_row)) // 8 * 8)
    r_steps = max(8, ((q + min_steps - 1) // min_steps + 7) // 8 * 8)
    r = min(r_budget, r_steps)
    if r >= q:
        return q
    return r


def _build_selector(w, wh, g, dtype):
    """One-hot (G*2W - W, 2*G*Wh) selector: first-half column g*wh+j picks the
    even source column 2j of chunk g, second half picks the odd column 2j+1."""
    k = g * 2 * w - w
    n = g * wh
    s = np.zeros((k, 2 * n), dtype=np.float32)
    gg = np.repeat(np.arange(g), wh)
    jj = np.tile(np.arange(wh), g)
    cols = gg * wh + jj
    s[gg * 2 * w + 2 * jj, cols] = 1.0
    s[gg * 2 * w + 2 * jj + 1, n + cols] = 1.0
    return jnp.asarray(s, dtype=dtype)


# ----------------------------------------------------------------------------
# Public entry point
# ----------------------------------------------------------------------------
def kpool_forward(x):
    """x: (B, K, C, H, W) with even H, W.  Returns (B, K, C, H//2, W//2)."""
    b, k, c, h, w = x.shape
    assert h % 2 == 0 and w % 2 == 0, "2x2/stride-2 max pool needs even H, W"
    # TODO(synk): integer dtypes would need a VPU-only compaction path (the MXU
    # selection is float); reject them instead of silently rounding.
    assert jnp.issubdtype(x.dtype, jnp.floating), "floating dtypes only"

    m = b * k * c
    hh, wh = h // 2, w // 2
    p = m * hh                                    # total number of 2-row pairs
    itemsize = jnp.dtype(x.dtype).itemsize
    # bf16 stays bf16 on the MXU (0/1 selection exact); everything else f32.
    compute_dtype = jnp.bfloat16 if x.dtype == jnp.bfloat16 else jnp.float32

    g = _choose_group(p, w)
    q = p // g
    lin, lout = g * 2 * w, g * wh
    nsel = 2 * lout

    selector = _build_selector(w, wh, g, compute_dtype)

    budget, vmem_limit = _vmem_budget()
    # Double-buffered in/out blocks + the f32 temporaries the kernel keeps live.
    bytes_per_row = (2 * lin * itemsize + 2 * lout * itemsize
                     + 4 * lin * 4 + 4 * lout * 4)
    r = _choose_rows(q, bytes_per_row, budget)
    grid = (pl.cdiv(q, r),)

    xf = x.reshape(q, lin)                        # free view: G row-pairs / row

    cost = pl.CostEstimate(
        flops=2 * 2 * q * (lin - w) * nsel,       # the two one-hot matmuls
        transcendentals=0,
        bytes_accessed=(x.size * itemsize + q * lout * itemsize
                        + selector.size * jnp.dtype(compute_dtype).itemsize),
    )

    kernel = functools.partial(_maxpool2x2_kernel, w=w,
                               compute_dtype=compute_dtype)

    out2d = pl.pallas_call(
        kernel,
        out_shape=jax.ShapeDtypeStruct((q, lout), x.dtype),
        grid_spec=pltpu.PrefetchScalarGridSpec(
            num_scalar_prefetch=0,
            grid=grid,
            in_specs=[
                pl.BlockSpec((r, lin), lambda i: (i, 0)),
                pl.BlockSpec(selector.shape, lambda i: (0, 0)),  # resident
            ],
            out_specs=pl.BlockSpec((r, lout), lambda i: (i, 0)),
        ),
        compiler_params=pltpu.CompilerParams(
            dimension_semantics=("parallel",),
            vmem_limit_bytes=vmem_limit,
        ),
        cost_estimate=cost,
    )(xf, selector)

    return out2d.reshape(b, k, c, hh, wh)


def _reference(x):
    b, k, c, h, w = x.shape
    xr = x.reshape(b, k, c, h // 2, 2, w // 2, 2)
    return jnp.max(xr, axis=(4, 6))


if __name__ == "__main__":
    key = jax.random.PRNGKey(0)

    # (B, K, C, H, W): 2 samples x 4 images, 3 channels, 16x16.
    x = jax.random.normal(key, (2, 4, 3, 16, 16), dtype=jnp.float32)
    out = jax.block_until_ready(kpool_forward(x))
    ref = _reference(x)
    assert out.shape == (2, 4, 3, 8, 8), out.shape
    assert out.dtype == x.dtype
    assert jnp.array_equal(out, ref), "f32 mismatch vs reference"

    # Awkward plane count -> ragged last grid block (cdiv path).
    x2 = jax.random.normal(jax.random.PRNGKey(1), (2, 3, 5, 16, 16),
                           dtype=jnp.float32)
    out2 = jax.block_until_ready(kpool_forward(x2))
    assert jnp.array_equal(out2, _reference(x2)), "ragged-grid mismatch"

    # bf16 path: operands stay bf16 through the MXU.
    xb = jax.random.normal(jax.random.PRNGKey(2), (2, 4, 3, 16, 16),
                           dtype=jnp.bfloat16)
    outb = jax.block_until_ready(kpool_forward(xb))
    assert outb.dtype == jnp.bfloat16
    assert jnp.array_equal(outb, _reference(xb)), "bf16 mismatch vs reference"

    print("KERNEL_OK")
</pallas_src>

<mosaic_0001>
module attributes {stable_mosaic.version = 11 : i64} {
  func.func @_maxpool2x2_kernel(%arg0: i32, %arg1: memref<8x256xf32, #tpu.memory_space<vmem>>, %arg2: memref<240x128xf32, #tpu.memory_space<vmem>>, %arg3: memref<8x64xf32, #tpu.memory_space<vmem>>) attributes {dimension_semantics = [#tpu.dimension_semantics<parallel>], iteration_bounds = array<i64: 3>, scalar_prefetch = 0 : i64, scratch_operands = 0 : i64, tpu.core_type = #tpu.core_type<tc>, window_params = [{transform_indices = @transform_0, window_bounds = array<i64: 8, 256>}, {pipeline_mode = #tpu.pipeline_mode<synchronous>, transform_indices = @transform_1, window_bounds = array<i64: 240, 128>}, {transform_indices = @transform_2, window_bounds = array<i64: 8, 64>}]} {
    %c0 = arith.constant 0 : index
    %c0_0 = arith.constant 0 : index
    %0 = vector.load %arg1[%c0, %c0_0] : memref<8x256xf32, #tpu.memory_space<vmem>>, vector<8x256xf32>
    %1 = vector.extract_strided_slice %0 {offsets = [0, 0], sizes = [8, 240], strides = [1, 1]} : vector<8x256xf32> to vector<8x240xf32>
    %2 = vector.extract_strided_slice %0 {offsets = [0, 16], sizes = [8, 240], strides = [1, 1]} : vector<8x256xf32> to vector<8x240xf32>
    %3 = arith.maximumf %1, %2 : vector<8x240xf32>
    %4 = math.absf %3 : vector<8x240xf32>
    %cst = arith.constant 0x7F800000 : f32
    %5 = vector.broadcast %cst : f32 to vector<8x240xf32>
    %6 = arith.cmpf olt, %4, %5 : vector<8x240xf32>
    %7 = arith.cmpf one, %3, %3 : vector<8x240xf32>
    %cst_1 = arith.constant 0.000000e+00 : f32
    %8 = vector.broadcast %cst_1 : f32 to vector<8x240xf32>
    %9 = arith.select %6, %3, %8 : vector<8x240xi1>, vector<8x240xf32>
    %cst_2 = arith.constant 0.000000e+00 : f32
    %10 = vector.broadcast %cst_2 : f32 to vector<8x240xf32>
    %11 = arith.cmpf ogt, %3, %10 : vector<8x240xf32>
    %cst_3 = arith.constant 2.000000e+00 : f32
    %cst_4 = arith.constant 3.000000e+00 : f32
    %12 = vector.broadcast %cst_3 : f32 to vector<8x240xf32>
    %13 = vector.broadcast %cst_4 : f32 to vector<8x240xf32>
    %14 = arith.select %11, %12, %13 : vector<8x240xi1>, vector<8x240xf32>
    %cst_5 = arith.constant 1.000000e+00 : f32
    %15 = vector.broadcast %cst_5 : f32 to vector<8x240xf32>
    %16 = arith.select %7, %15, %14 : vector<8x240xi1>, vector<8x240xf32>
    %cst_6 = arith.constant 0.000000e+00 : f32
    %17 = vector.broadcast %cst_6 : f32 to vector<8x240xf32>
    %18 = arith.select %6, %17, %16 : vector<8x240xi1>, vector<8x240xf32>
    %c0_7 = arith.constant 0 : index
    %c0_8 = arith.constant 0 : index
    %19 = vector.load %arg2[%c0_7, %c0_8] : memref<240x128xf32, #tpu.memory_space<vmem>>, vector<240x128xf32>
    %cst_9 = arith.constant dense<0.000000e+00> : vector<8x128xf32>
    %20 = tpu.matmul %9, %19, %cst_9 {dimension_numbers = #tpu.dot_dimension_numbers<[1], [0], [0], [1], [0, 0, 1, 1], [], []>} : vector<8x240xf32>, vector<240x128xf32>, vector<8x128xf32> -> vector<8x128xf32>
    %cst_10 = arith.constant dense<0.000000e+00> : vector<8x128xf32>
    %21 = tpu.matmul %18, %19, %cst_10 {dimension_numbers = #tpu.dot_dimension_numbers<[1], [0], [0], [1], [0, 0, 1, 1], [], []>} : vector<8x240xf32>, vector<240x128xf32>, vector<8x128xf32> -> vector<8x128xf32>
    %22 = vector.extract_strided_slice %20 {offsets = [0, 0], sizes = [8, 64], strides = [1, 1]} : vector<8x128xf32> to vector<8x64xf32>
    %23 = vector.extract_strided_slice %21 {offsets = [0, 0], sizes = [8, 64], strides = [1, 1]} : vector<8x128xf32> to vector<8x64xf32>
    %cst_11 = arith.constant 1.000000e+00 : f32
    %24 = vector.broadcast %cst_11 : f32 to vector<8x64xf32>
    %25 = arith.cmpf oeq, %23, %24 : vector<8x64xf32>
    %cst_12 = arith.constant 0x7FC00000 : f32
    %26 = vector.broadcast %cst_12 : f32 to vector<8x64xf32>
    %27 = arith.select %25, %26, %22 : vector<8x64xi1>, vector<8x64xf32>
    %cst_13 = arith.constant 2.000000e+00 : f32
    %28 = vector.broadcast %cst_13 : f32 to vector<8x64xf32>
    %29 = arith.cmpf oeq, %23, %28 : vector<8x64xf32>
    %cst_14 = arith.constant 0x7F800000 : f32
    %30 = vector.broadcast %cst_14 : f32 to vector<8x64xf32>
    %31 = arith.select %29, %30, %27 : vector<8x64xi1>, vector<8x64xf32>
    %cst_15 = arith.constant 3.000000e+00 : f32
    %32 = vector.broadcast %cst_15 : f32 to vector<8x64xf32>
    %33 = arith.cmpf oeq, %23, %32 : vector<8x64xf32>
    %cst_16 = arith.constant 0xFF800000 : f32
    %34 = vector.broadcast %cst_16 : f32 to vector<8x64xf32>
    %35 = arith.select %33, %34, %31 : vector<8x64xi1>, vector<8x64xf32>
    %36 = vector.extract_strided_slice %20 {offsets = [0, 64], sizes = [8, 64], strides = [1, 1]} : vector<8x128xf32> to vector<8x64xf32>
    %37 = vector.extract_strided_slice %21 {offsets = [0, 64], sizes = [8, 64], strides = [1, 1]} : vector<8x128xf32> to vector<8x64xf32>
    %cst_17 = arith.constant 1.000000e+00 : f32
    %38 = vector.broadcast %cst_17 : f32 to vector<8x64xf32>
    %39 = arith.cmpf oeq, %37, %38 : vector<8x64xf32>
    %cst_18 = arith.constant 0x7FC00000 : f32
    %40 = vector.broadcast %cst_18 : f32 to vector<8x64xf32>
    %41 = arith.select %39, %40, %36 : vector<8x64xi1>, vector<8x64xf32>
    %cst_19 = arith.constant 2.000000e+00 : f32
    %42 = vector.broadcast %cst_19 : f32 to vector<8x64xf32>
    %43 = arith.cmpf oeq, %37, %42 : vector<8x64xf32>
    %cst_20 = arith.constant 0x7F800000 : f32
    %44 = vector.broadcast %cst_20 : f32 to vector<8x64xf32>
    %45 = arith.select %43, %44, %41 : vector<8x64xi1>, vector<8x64xf32>
    %cst_21 = arith.constant 3.000000e+00 : f32
    %46 = vector.broadcast %cst_21 : f32 to vector<8x64xf32>
    %47 = arith.cmpf oeq, %37, %46 : vector<8x64xf32>
    %cst_22 = arith.constant 0xFF800000 : f32
    %48 = vector.broadcast %cst_22 : f32 to vector<8x64xf32>
    %49 = arith.select %47, %48, %45 : vector<8x64xi1>, vector<8x64xf32>
    %50 = arith.maximumf %35, %49 : vector<8x64xf32>
    %c0_23 = arith.constant 0 : index
    %c0_24 = arith.constant 0 : index
    %51 = vector.load %arg3[%c0_23, %c0_24] : memref<8x64xf32, #tpu.memory_space<vmem>>, vector<8x64xf32>
    tpu.vector_store %arg3[%c0_23, %c0_24], %50 {strides = array<i32>} : memref<8x64xf32, #tpu.memory_space<vmem>>, vector<8x64xf32>,
    return
  }
  func.func @transform_0(%arg0: i32) -> (i32, i32) {
    %c0_i32 = arith.constant 0 : i32
    %c0_i32_0 = arith.constant 0 : i32
    return %arg0, %c0_i32 : i32, i32
  }
  func.func @transform_1(%arg0: i32) -> (i32, i32) {
    %c0_i32 = arith.constant 0 : i32
    %c0_i32_0 = arith.constant 0 : i32
    %c0_i32_1 = arith.constant 0 : i32
    return %c0_i32, %c0_i32_0 : i32, i32
  }
  func.func @transform_2(%arg0: i32) -> (i32, i32) {
    %c0_i32 = arith.constant 0 : i32
    %c0_i32_0 = arith.constant 0 : i32
    return %arg0, %c0_i32 : i32, i32
  }
}

</mosaic_0001>

<bundles_post_ra>
// kernel: tpu_custom_call.1
= control target key start
LH: loop header
LB: loop body
LE: loop exit
PB: predicated region body
PF: predicated region fallthrough
CT: control target
= control target key end

     0   :  { %7 = vsyncpa [#allocation3], 0  ;;  %s1045_s0 = inlined_call_operand.hbm [shape: f32[24,256], index: 0, kind: input, shape index: {}]   ;;  %s1046_s1 = inlined_call_operand.hbm [shape: f32[240,128], index: 1, kind: input, shape index: {}]   ;;  %s1047_s2 = inlined_call_operand.hbm [shape: f32[24,64], index: 2, kind: output, shape index: {}]  }
   0x1   :  { %9 = vsyncpa [#allocation3 + $0x1], 0 }
   0x2   :  { %10 = vsyncpa [#allocation6], 0 }
   0x3   :  { %11 = vsyncpa [#allocation4], 0 }
   0x4   :  { %13 = vsyncpa [#allocation4 + $0x1], 0  ;;  %s816_s9 = smov 0   ;;  %s818_s10 = smov 0  }
   0x5   :  { %s820_s11 = smov 0   ;;  %s822_s12 = smov 0  }
   0x6 LB: > { %s837_s13 = sadd.s32 4294967295, %s790_s12   ;;  %s488_s14 = sadd.s32 4294967294, %s790_s12   ;;  %s790_s12 = sphi %s822_s12, %s1066_s12   ;;  %s786_s11 = sphi %s820_s11, %s1065_s11   ;;  %s782_s10 = sphi %s818_s10, %s1064_s10   ;;  %s778_s9 = sphi %s816_s9, %s1063_s9  }
   0x7   : > { %p39_p0 = scmp.ne.s32.totalorder %s782_s10, %s778_s9  ;;  %p1048_p1 = scmp.eq.s32.totalorder %s837_s13, 0 }
   0x8   : > { %p90_p3 = scmp.eq.s32.totalorder %s488_s14, 2  ;;  %p489_p5 = scmp.ge.s32.totalorder %s790_s12, 1 }
   0x9   : > { %p846_p4 = por %p1048_p1, %p39_p0  ;;  %p97_p7 = scmp.lt.s32.totalorder %s790_s12, 4 }
   0xa   : > { %p851_p6 = por %p90_p3, %p39_p0  ;;  %s792_s18 = smov [#allocation5]  }
   0xb   : > { %s1051_s15 = scalar_select %p846_p4, 1, 0 }
   0xc   : > { %s1052_s16 = scalar_select %p851_p6, 1, 0 }
   0xd   : > { %p856_p8 = pnand %p489_p5, %p97_p7  ;;  %s109_s19 = sshll.u32 %s792_s18, 4  ;;  %s110_s19 = int_to_ptr.vmem [resolvable:$true] %s109_s19 }
   0xe   : > { %s869_s21 = sadd.s32 1, %s790_s12   ;;  %s26_s22 = sadd.s32 1, %s786_s11 }
   0xf   : > { %s1053_s17 = scalar_select %p856_p8, 1, 0 }
  0x10   : > { %p607_p9 = pneg %p856_p8  ;;  %s23_s23 = ssub.s32 %s790_s12, %s869_s21 }
  0x11   : > { %s662_s26 = scalar_lea.hbm %s1046_s1, 3840 }
  0x12   : > { %p864_p10 = pnand %p607_p9, %p1048_p1  ;;  %p663_p11 = scmp.ne.s32.totalorder %s1046_s1, %s662_s26 }
  0x13   : > { %p669_p3 = scmp.lt.u32.totalorder %s662_s26, %s1046_s1 }
  0x14   : > { %p664_p12 = pneg %p864_p10 }
  0x16   : > { %p665_p13 = pnand %p664_p12, %p663_p11 }
  0x18   : > { %p666_p0 = pneg %p665_p13 }
  0x1a   : > { %p671_p5 = pnand %p669_p3, %p666_p0 }
  0x1c   : > { %674 = shalt.err (!%p671_p5)
}
  0x1d   : > { %s675_s3 = scalar_lea.vmem %s110_s19, 3840  ;;  %p683_p2 = scmp.lt.s32.totalorder %s110_s19, %s110_s19 }
  0x1e   : > { %p676_p7 = scmp.ne.s32.totalorder %s110_s19, %s675_s3  ;;  %p684_p6 = scmp.lt.s32.totalorder %s675_s3, %s675_s3 }
  0x20   : > { %p678_p9 = pnand %p676_p7, %p664_p12  ;;  %p685_p4 = por %p684_p6, %p683_p2 }
  0x22   : > { %p679_p1 = pneg %p678_p9 }
  0x24   : > { %p686_p8 = pnand %p685_p4, %p679_p1 }
  0x26   : > { %689 = shalt.err (!%p686_p8)
}
  0x27   : > { %s793_s4 = smov 128   ;;  %s794_s5 = smov 8  }
  0x28   : > { %610 = dma.hbm_to_vmem [thread:$0]  (!%p864_p10), %s1046_s1, 3840, %s110_s19, [#allocation6], %s793_s4, %s793_s4, %s794_s5  }
  0x29   : > { %p24_p11 = scmp.eq.s32.totalorder %s23_s23, 0  ;;  %p33_p2 = scmp.ne.s32.totalorder %s786_s11, %s782_s10 }
  0x2a   : > { %p34_p1 = scmp.eq.s32.totalorder %s790_s12, 0  ;;  %p620_p4 = scmp.lt.s32.totalorder %s790_s12, 3 }
  0x2b   : > { %s895_s8 = scalar_select %p24_p11, %s786_s11, %s26_s22  }
  0x2c   : > { %p35_p6 = por %p34_p1, %p33_p2  ;;  %p1055_p8 = scmp.eq.s32.totalorder %s837_s13, 2 }
  0x2d   : > { %s123_s18 = sand.u32 1, %s786_s11   ;;  %s508_s24 = sshll.u32 %s790_s12, 8 }
  0x2e   : > { %p899_p12 = por %p1055_p8, %p33_p2  ;;  %s492_s25 = sshll.u32 %s123_s18, 4 }
  0x2f   : > { %s908_s27 = scalar_lea.hbm %s1045_s0, %s508_s24  ;;  %s127_s19 = scalar_lea.vmem [#allocation2], %s492_s25 }
  0x30   : > { %s135_s22 = sshll.u32 %s127_s19, 4  ;;  %p910_p10 = pnand %p620_p4, %p35_p6  ;;  %s914_s22 = int_to_ptr.vmem [resolvable:$true] %s135_s22 }
  0x31   : > { %s124_s28 = scalar_lea.sflag [#allocation3], %s123_s18  ;;  %s690_s29 = scalar_lea.hbm %s908_s27, 256 }
  0x32   : > { %p691_p13 = scmp.ne.s32.totalorder %s908_s27, %s690_s29  ;;  %p692_p0 = pneg %p910_p10 }
  0x33   : > { %s695_s4 = scalar_lea.hbm %s1045_s0, 768  ;;  %p696_p7 = scmp.lt.u32.totalorder %s908_s27, %s1045_s0 }
  0x34   : > { %p693_p3 = pnand %p692_p0, %p691_p13  ;;  %p697_p9 = scmp.lt.u32.totalorder %s695_s4, %s690_s29 }
  0x35   : > { %p699_p2 = scmp.lt.u32.totalorder %s690_s29, %s908_s27 }
  0x36   : > { %p694_p5 = pneg %p693_p3  ;;  %p698_p11 = por %p697_p9, %p696_p7 }
  0x38   : > { %p700_p1 = por %p699_p2, %p698_p11 }
  0x3a   : > { %p701_p4 = pnand %p700_p1, %p694_p5 }
  0x3c   : > { %704 = shalt.err (!%p701_p4)
}
  0x3d   : > { %s705_s7 = scalar_lea.vmem %s914_s22, 256  ;;  %s795_s18 = smov [#allocation2]  }
  0x3e   : > { %p706_p6 = scmp.ne.s32.totalorder %s914_s22, %s705_s7  ;;  %s710_s24 = sshll.u32 %s795_s18, 4  ;;  %s711_s24 = int_to_ptr.vmem [resolvable:$false] %s710_s24 }
  0x3f   : > { %s712_s25 = scalar_lea.vmem %s711_s24, 512  ;;  %p713_p3 = scmp.lt.s32.totalorder %s914_s22, %s711_s24 }
  0x40   : > { %p708_p8 = pnand %p706_p6, %p692_p0  ;;  %p714_p7 = scmp.lt.s32.totalorder %s712_s25, %s705_s7 }
  0x42   : > { %p709_p13 = pneg %p708_p8  ;;  %p715_p9 = por %p714_p7, %p713_p3 }
  0x44   : > { %p716_p11 = pnand %p715_p9, %p709_p13 }
  0x46   : > { %719 = shalt.err (!%p716_p11)
}
  0x47   : > { %614 = dma.hbm_to_vmem [thread:$0]  (!%p910_p10), %s908_s27, 256, %s914_s22, %s124_s28  }
  0x48   : > { %p1058_p5 = scmp.ne.s32.totalorder %s1053_s17, 0 }
  0x49   : > { %s944_s20 = sand.u32 (!%p1058_p5), 1, %s782_s10   ;;  %p1059_p0 = scmp.ne.s32.totalorder (!%p1058_p5), %s1051_s15, 0 }
  0x4a   : > { %144 = sbr.rel (%p1058_p5) target bundleno = 560 (0x230), region = 28  ;;  %s496_s26 = sshll.u32 (!%p1058_p5), %s944_s20, 4 }
  0x4b   : > { %s147_s19 = scalar_lea.sflag (!%p1058_p5), [#allocation3], %s944_s20  ;;  %s150_s29 = scalar_lea.vmem (!%p1058_p5), [#allocation2], %s496_s26 }
  0x51   : > { %765 = dma.done.wait (%p1059_p0), %s147_s19, 256  }
  0x52   : > { %767 = vsyncadd (%p1059_p0), %s147_s19, 4294967040  ;;  %p1060_p2 = scmp.eq.s32.totalorder %s837_s13, 0 }
  0x54   : > { %769 = dma.done.wait (%p1060_p2), [#allocation6], 3840   ;;  %p1061_p10 = pmov %p1060_p2 }
  0x55   : > { %v796_v0 = vmov 0.0|0.0   ;;  %v958_v1 = vld [vmem:[%s150_s29] sm:$0xff]  ;;  %s797_s17 = smov 112   ;;  %v206_v3 = vld [vmem:[#allocation5 + $0x8] sm:$0xff]  ;;  %v208_v5 = vld [vmem:[#allocation5 + $0x18] sm:$0xff]  ;;  %vm183_vm0 = vcmask 916480  }
  0x56   : > { %771 = vsyncadd (%p1061_p10), [#allocation6], 4294963456  ;;  %509 = vmatprep.subr.bf16.mxu0 %v796_v0  ;;  %554 = vmatprep.subr.bf16.mxu1 %v796_v0  ;;  %v205_v2 = vld [vmem:[#allocation5] sm:$0xff]  ;;  %v207_v4 = vld [vmem:[#allocation5 + $0x10] sm:$0xff]  ;;  %v798_v54 = vmov 3.0   ;;  %s799_s15 = smov 64  }
  0x57   : > { %179 = vrot.lane.b32.xlu0 %v958_v1, %s797_s17  ;;  %v961_v6 = vld [vmem:[%s150_s29 + $0x8] sm:$0xff]  ;;  %v510_v7 = vpack.c.bf16 %v206_v3, %v205_v2  ;;  %v513_v8 = vpack.c.bf16 %v208_v5, %v207_v4  ;;  %v209_v9 = vld [vmem:[#allocation5 + $0x20] sm:$0xff]  ;;  %v211_v12 = vld [vmem:[#allocation5 + $0x30] sm:$0xff]  ;;  %s498_s27 = sshll.u32 %s944_s20, 3  ;;  %s505_s22 = sshll.u32 %s837_s13, 7  ;;  %vm392_vm11 = vcmask 523264  }
  0x58   : > { %v210_v10 = vld [vmem:[#allocation5 + $0x28] sm:$0xff]  ;;  %v212_v13 = vld [vmem:[#allocation5 + $0x38] sm:$0xff]  ;;  %v213_v15 = vld [vmem:[#allocation5 + $0x40] sm:$0xff]  ;;  %s174_s23 = scalar_lea.vmem [#allocation7], %s498_s27  ;;  %s1002_s4 = scalar_lea.hbm %s1047_s2, %s505_s22 }
  0x59   : > { %511 = vmatpush1.bf16.msra.mxu0 %v510_v7  ;;  %556 = vmatpush1.bf16.msra.mxu1 %v510_v7  ;;  %v516_v11 = vpack.c.bf16 %v210_v10, %v209_v9  ;;  %v519_v14 = vpack.c.bf16 %v212_v13, %v211_v12  ;;  %v214_v16 = vld [vmem:[#allocation5 + $0x48] sm:$0xff]  ;;  %v215_v18 = vld [vmem:[#allocation5 + $0x50] sm:$0xff]  ;;  %v216_v19 = vld [vmem:[#allocation5 + $0x58] sm:$0xff]  ;;  %s408_s28 = sshll.u32 %s174_s23, 4  ;;  %s395_s5 = scalar_lea.sflag [#allocation4], %s944_s20  ;;  %s1004_s28 = int_to_ptr.vmem [resolvable:$true] %s408_s28 }
  0x5a   : > { %512 = vmatprep.subr.bf16.mxu0 %v796_v0  ;;  %557 = vmatprep.subr.bf16.mxu1 %v796_v0  ;;  %v522_v17 = vpack.c.bf16 %v214_v16, %v213_v15  ;;  %v525_v20 = vpack.c.bf16 %v216_v19, %v215_v18  ;;  %v217_v21 = vld [vmem:[#allocation5 + $0x60] sm:$0xff]  ;;  %v218_v22 = vld [vmem:[#allocation5 + $0x68] sm:$0xff]  ;;  %v219_v24 = vld [vmem:[#allocation5 + $0x70] sm:$0xff]  ;;  %s720_s6 = scalar_lea.vmem %s1004_s28, 128  ;;  %s800_s13 = smov [#allocation7]  }
  0x5b   : > { %181 = vrot.lane.b32.xlu0 %v961_v6, %s797_s17  ;;  %v528_v23 = vpack.c.bf16 %v218_v22, %v217_v21  ;;  %v220_v25 = vld [vmem:[#allocation5 + $0x78] sm:$0xff]  ;;  %v221_v27 = vld [vmem:[#allocation5 + $0x80] sm:$0xff]  ;;  %v222_v28 = vld [vmem:[#allocation5 + $0x88] sm:$0xff]  ;;  %p721_p1 = scmp.ne.s32.totalorder %s1004_s28, %s720_s6  ;;  %s724_s7 = sshll.u32 %s800_s13, 4  ;;  %s725_s7 = int_to_ptr.vmem [resolvable:$false] %s724_s7 }
  0x5c   : > { %v531_v26 = vpack.c.bf16 %v220_v25, %v219_v24  ;;  %v534_v29 = vpack.c.bf16 %v222_v28, %v221_v27  ;;  %v223_v30 = vld [vmem:[#allocation5 + $0x90] sm:$0xff]  ;;  %v224_v31 = vld [vmem:[#allocation5 + $0x98] sm:$0xff]  ;;  %v225_v33 = vld [vmem:[#allocation5 + $0xa0] sm:$0xff]  ;;  %s726_s18 = scalar_lea.vmem %s725_s7, 256  ;;  %p727_p8 = scmp.lt.s32.totalorder %s1004_s28, %s725_s7 }
  0x5d   : > { %514 = vmatpush1.bf16.msra.mxu0 %v513_v8  ;;  %559 = vmatpush1.bf16.msra.mxu1 %v513_v8  ;;  %v537_v32 = vpack.c.bf16 %v224_v31, %v223_v30  ;;  %v226_v34 = vld [vmem:[#allocation5 + $0xa8] sm:$0xff]  ;;  %v227_v36 = vld [vmem:[#allocation5 + $0xb0] sm:$0xff]  ;;  %v228_v37 = vld [vmem:[#allocation5 + $0xb8] sm:$0xff]  ;;  %p722_p4 = pnand %p721_p1, %p899_p12  ;;  %p728_p13 = scmp.lt.s32.totalorder %s726_s18, %s720_s6 }
  0x5e   : > { %515 = vmatprep.subr.bf16.mxu0 %v796_v0  ;;  %560 = vmatprep.subr.bf16.mxu1 %v796_v0  ;;  %v540_v35 = vpack.c.bf16 %v226_v34, %v225_v33  ;;  %v543_v38 = vpack.c.bf16 %v228_v37, %v227_v36  ;;  %v229_v39 = vld [vmem:[#allocation5 + $0xc0] sm:$0xff]  ;;  %v230_v40 = vld [vmem:[#allocation5 + $0xc8] sm:$0xff]  ;;  %v231_v42 = vld [vmem:[#allocation5 + $0xd0] sm:$0xff] }
  0x5f   : > { %v546_v41 = vpack.c.bf16 %v230_v40, %v229_v39  ;;  %v232_v43 = vld [vmem:[#allocation5 + $0xd8] sm:$0xff]  ;;  %v233_v45 = vld [vmem:[#allocation5 + $0xe0] sm:$0xff]  ;;  %v234_v46 = vld [vmem:[#allocation5 + $0xe8] sm:$0xff]  ;;  %p723_p6 = pneg %p722_p4  ;;  %p729_p3 = por %p728_p13, %p727_p8 }
  0x60   : > { %v549_v44 = vpack.c.bf16 %v232_v43, %v231_v42  ;;  %v552_v47 = vpack.c.bf16 %v234_v46, %v233_v45 }
  0x61   : > { %517 = vmatpush1.bf16.msra.mxu0 %v516_v11  ;;  %562 = vmatpush1.bf16.msra.mxu1 %v516_v11  ;;  %p730_p7 = pnand %p729_p3, %p723_p6 }
  0x62   : > { %518 = vmatprep.subr.bf16.mxu0 %v796_v0  ;;  %563 = vmatprep.subr.bf16.mxu1 %v796_v0 }
  0x65   : > { %520 = vmatpush1.bf16.msra.mxu0 %v519_v14  ;;  %565 = vmatpush1.bf16.msra.mxu1 %v519_v14 }
  0x66   : > { %521 = vmatprep.subr.bf16.mxu0 %v796_v0  ;;  %566 = vmatprep.subr.bf16.mxu1 %v796_v0 }
  0x69   : > { %523 = vmatpush1.bf16.msra.mxu0 %v522_v17  ;;  %568 = vmatpush1.bf16.msra.mxu1 %v522_v17 }
  0x6a   : > { %524 = vmatprep.subr.bf16.mxu0 %v796_v0  ;;  %569 = vmatprep.subr.bf16.mxu1 %v796_v0 }
  0x6d   : > { %526 = vmatpush1.bf16.msra.mxu0 %v525_v20  ;;  %571 = vmatpush1.bf16.msra.mxu1 %v525_v20 }
  0x6e   : > { %527 = vmatprep.subr.bf16.mxu0 %v796_v0  ;;  %572 = vmatprep.subr.bf16.mxu1 %v796_v0 }
  0x71   : > { %529 = vmatpush1.bf16.msra.mxu0 %v528_v23  ;;  %574 = vmatpush1.bf16.msra.mxu1 %v528_v23 }
  0x72   : > { %530 = vmatprep.subr.bf16.mxu0 %v796_v0  ;;  %575 = vmatprep.subr.bf16.mxu1 %v796_v0 }
  0x75   : > { %532 = vmatpush1.bf16.msra.mxu0 %v531_v26  ;;  %577 = vmatpush1.bf16.msra.mxu1 %v531_v26 }
  0x76   : > { %533 = vmatprep.subr.bf16.mxu0 %v796_v0  ;;  %578 = vmatprep.subr.bf16.mxu1 %v796_v0 }
  0x79   : > { %535 = vmatpush1.bf16.msra.mxu0 %v534_v29  ;;  %580 = vmatpush1.bf16.msra.mxu1 %v534_v29 }
  0x7a   : > { %536 = vmatprep.subr.bf16.mxu0 %v796_v0  ;;  %581 = vmatprep.subr.bf16.mxu1 %v796_v0 }
  0x7d   : > { %538 = vmatpush1.bf16.msra.mxu0 %v537_v32  ;;  %583 = vmatpush1.bf16.msra.mxu1 %v537_v32 }
  0x7e   : > { %539 = vmatprep.subr.bf16.mxu0 %v796_v0  ;;  %584 = vmatprep.subr.bf16.mxu1 %v796_v0 }
  0x81   : > { %541 = vmatpush1.bf16.msra.mxu0 %v540_v35  ;;  %586 = vmatpush1.bf16.msra.mxu1 %v540_v35 }
  0x82   : > { %542 = vmatprep.subr.bf16.mxu0 %v796_v0  ;;  %587 = vmatprep.subr.bf16.mxu1 %v796_v0 }
  0x85   : > { %544 = vmatpush1.bf16.msra.mxu0 %v543_v38  ;;  %589 = vmatpush1.bf16.msra.mxu1 %v543_v38 }
  0x86   : > { %545 = vmatprep.subr.bf16.mxu0 %v796_v0  ;;  %590 = vmatprep.subr.bf16.mxu1 %v796_v0 }
  0x89   : > { %547 = vmatpush1.bf16.msra.mxu0 %v546_v41  ;;  %592 = vmatpush1.bf16.msra.mxu1 %v546_v41 }
  0x8a   : > { %548 = vmatprep.subr.bf16.mxu0 %v796_v0  ;;  %593 = vmatprep.subr.bf16.mxu1 %v796_v0 }
  0x8d   : > { %550 = vmatpush1.bf16.msra.mxu0 %v549_v44  ;;  %595 = vmatpush1.bf16.msra.mxu1 %v549_v44 }
  0x8e   : > { %551 = vmatprep.subr.bf16.mxu0 %v796_v0  ;;  %596 = vmatprep.subr.bf16.mxu1 %v796_v0 }
  0x91   : > { %553 = vmatpush1.bf16.msra.mxu0 %v552_v47  ;;  %598 = vmatpush1.bf16.msra.mxu1 %v552_v47 }
  0xc9   : > { %v180_v48 = vpop.permute.xlu0 %179 }
  0xcd   : > { %v182_v49 = vpop.permute.xlu0 %181 }
  0xce   : > { %v184_v50 = vsel %vm183_vm0, %v180_v48, %v182_v49  ;;  %v188_v51 = vmax.f32 %v961_v6, %v182_v49 }
  0xcf   : > { %v187_v52 = vmax.f32 %v958_v1, %v184_v50 }
  0xd0   : > { %v190_v53 = vand.u32 2147483647, %v188_v51  ;;  %vm194_vm1 = vcmp.ne.f32.partialorder %v188_v51, %v188_v51  ;;  %vm198_vm2 = vcmp.gt.f32.partialorder %v188_v51, 0.0 }
  0xd1   : > { %v200_v55 = vsel %vm198_vm2, 2.0, %v798_v54  ;;  %v189_v56 = vand.u32 2147483647, %v187_v52  ;;  %vm193_vm3 = vcmp.ne.f32.partialorder %v187_v52, %v187_v52  ;;  %vm197_vm4 = vcmp.gt.f32.partialorder %v187_v52, 0.0 }
  0xd2   : > { %vm192_vm5 = vcmp.lt.f32.partialorder %v190_v53, inf  ;;  %v202_v57 = vsel %vm194_vm1, 1.0, %v200_v55  ;;  %v199_v58 = vsel %vm197_vm4, 2.0, %v798_v54 }
  0xd3   : > { %v196_v59 = vsel %vm192_vm5, %v188_v51, 0.0  ;;  %v204_v60 = vsel %vm192_vm5, 0.0, %v202_v57  ;;  %vm191_vm6 = vcmp.lt.f32.partialorder %v189_v56, inf  ;;  %v201_v61 = vsel %vm193_vm3, 1.0, %v199_v58 }
  0xd4   : > { %499 = vmatprep.mubr.msk.f32.mxu0 %vm183_vm0, %v196_v59  ;;  %501 = vmatprep.mubr.msk.f32.mxu1 %vm183_vm0, %v204_v60  ;;  %vm502_vm7 = vmneg %vm191_vm6 }
  0xd5   : > { %500 = vmatmul.mubr.msk.f32.vlgmr.msra.gmra.mrb[0].mxu0 %vm191_vm6, %v187_v52  ;;  %503 = vmatmul.mubr.msk.f32.vlgmr.msra.gmra.mrb[0].mxu1 %vm502_vm7, %v201_v61 }
 0x1a8   : > { %v304_v62 = vpop.f32.mrb[0].mxu0  ;;  %v377_v63 = vpop.f32.mrb[0].mxu1 }
 0x1a9   : > { %v306_v0 = vpop.f32.mrb[1].mxu0  ;;  %v379_v1 = vpop.f32.mrb[1].mxu1  ;;  %vm381_vm8 = vcmp.eq.f32.partialorder %v377_v63, 1.0  ;;  %vm383_vm9 = vcmp.eq.f32.partialorder %v377_v63, 2.0  ;;  %vm385_vm10 = vcmp.eq.f32.partialorder %v377_v63, 3.0 }
 0x1aa   : > { %v382_v2 = vsel %vm381_vm8, nan, %v304_v62 }
 0x1ab   : > { %v384_v3 = vsel %vm383_vm9, inf, %v382_v2 }
 0x1ac   : > { %v386_v4 = vsel %vm385_vm10, -inf, %v384_v3 }
 0x1ad   : > { %388 = vrot.lane.b32.xlu1 %v386_v4, %s799_s15 }
 0x21f   : > { %v389_v5 = vpop.permute.xlu1 %388 }
 0x220   : > { %v391_v6 = vmax.f32 %v386_v4, %v389_v5 }
 0x222   : > { %393 = vst.msk [vmem:[%s174_s23] sm:$0xff] %vm392_vm11, %v391_v6 }
 0x223   : > { %733 = shalt.err (!%p730_p7)
}
 0x224   : > { %s734_s24 = scalar_lea.hbm %s1002_s4, 128  ;;  %s738_s26 = scalar_lea.hbm %s1047_s2, 384 }
 0x225   : > { %p735_p9 = scmp.ne.s32.totalorder %s1002_s4, %s734_s24  ;;  %p739_p0 = scmp.lt.u32.totalorder %s1002_s4, %s1047_s2 }
 0x226   : > { %p740_p2 = scmp.lt.u32.totalorder %s738_s26, %s734_s24  ;;  %p742_p1 = scmp.lt.u32.totalorder %s734_s24, %s1002_s4 }
 0x227   : > { %p736_p11 = pnand %p735_p9, %p899_p12 }
 0x228   : > { %p741_p10 = por %p740_p2, %p739_p0 }
 0x229   : > { %p737_p5 = pneg %p736_p11 }
 0x22a   : > { %p743_p4 = por %p742_p1, %p741_p10 }
 0x22c   : > { %p744_p6 = pnand %p743_p4, %p737_p5 }
 0x22e   : > { %747 = shalt.err (!%p744_p6)
}
 0x22f   : > { %605 = dma.vmem_to_hbm [thread:$0]  (%p899_p12), %s1004_s28, 128, %s1002_s4, %s395_s5  }
 0x230 PF: > { %p622_p8 = scmp.ge.s32.totalorder %s790_s12, 2  ;;  %s420_s17 = sand.u32 1, %s778_s9  }
 0x231   : > { %p1062_p13 = scmp.ne.s32.totalorder %s1052_s16, 0  ;;  %s421_s15 = scalar_lea.sflag [#allocation4], %s420_s17 }
 0x233   : > { %p616_p3 = pnand %p622_p8, %p1062_p13 }
 0x235   : > { %773 = dma.done.wait (!%p616_p3), %s421_s15, 128  }
 0x236   : > { %775 = vsyncadd (!%p616_p3), %s421_s15, 4294967168  ;;  %p16_p7 = scmp.ge.s32.totalorder %s869_s21, 5   ;;  %s1063_s9 = smov %s782_s10 }
 0x237   : > { %s1064_s10 = smov %s786_s11  ;;  %s1065_s11 = smov %s895_s8 }
 0x238   : > { %s1066_s12 = smov %s869_s21  ;;  %18 = sbr.rel (!%p16_p7) target bundleno = 6 (0x6), region = 77 }
 0x23f   :  { %426 = vsyncpa [#allocation3], 1 }
 0x240   :  { %428 = vsyncpa [#allocation3 + $0x1], 1 }
 0x241   :  { %429 = vsyncpa [#allocation6], 1 }
 0x242   :  { %430 = vsyncpa [#allocation4], 1 }
 0x243   :  { %432 = vsyncpa [#allocation4 + $0x1], 1 }

</bundles_post_ra>
